<compile_context>
chip_gen: v6e
topology: v6e:2x2x1
jax: 0.10.0
libtpu: 0.0.40
codegen_flags: <defaults>
</compile_context>

<pallas_src>
import functools

import jax
import jax.numpy as jnp
from jax.experimental import pallas as pl
from jax.experimental.pallas import tpu as pltpu


def _round_up(n: int, m: int) -> int:
    return ((n + m - 1) // m) * m


def encoder_kernel(x_ref, w1_ref, b1_ref, w2_ref, b2_ref, w3_ref, b3_ref,
                   o_ref, *, last_col):
    # Layer 1: Linear + Sigmoid (MXU accumulates in f32; VPU/EUP work in f32).
    h1 = jnp.dot(x_ref[...], w1_ref[...], preferred_element_type=jnp.float32)
    h1 = jax.nn.sigmoid(h1 + b1_ref[...])
    # Layer 2: Linear + Sigmoid (cast LHS to the weight dtype so a bf16 weight
    # path keeps the MXU in its native bf16 mode; no-op when everything is f32).
    h2 = jnp.dot(h1.astype(w2_ref.dtype), w2_ref[...],
                 preferred_element_type=jnp.float32)
    h2 = jax.nn.sigmoid(h2 + b2_ref[...])
    # Layer 3: Linear over the real out_dim columns only (no lane padding).
    y = jnp.dot(h2.astype(w3_ref.dtype), w3_ref[...],
                preferred_element_type=jnp.float32) + b3_ref[...]
    # y[:, last_col] = sigmoid(y[:, last_col]) -- select on the lane index.
    # Whole-tile sigmoid is essentially free (EUP slot otherwise idle).
    col = jax.lax.broadcasted_iota(jnp.int32, y.shape, dimension=1)
    y = jnp.where(col == last_col, jax.nn.sigmoid(y), y)
    o_ref[...] = y.astype(o_ref.dtype)


def encoder_forward(x, w1, b1, w2, b2, w3, b3, *,
                    max_tile_b=8192, bf16_matmul_inputs=False):
    """x: (B, input_dim); weights stored as (in, out); biases as (1, out)."""
    B, input_dim = x.shape
    hidden_dim = w2.shape[1]
    out_dim = w3.shape[1]

    # ---- Optional bf16 storage for MXU operands (halves the x read stream on
    # v6e/v7x). Biases stay f32; all element-wise math stays f32 in-kernel. ----
    if bf16_matmul_inputs:
        x = x.astype(jnp.bfloat16)
        w1 = w1.astype(jnp.bfloat16)
        w2 = w2.astype(jnp.bfloat16)
        w3 = w3.astype(jnp.bfloat16)

    # ---- Batch tiling: derive the tile from B (not the other way around) so
    # padding waste is bounded; keep the grid even so v7x's 2 TCs stay busy. ----
    b_min = _round_up(max(B, 8), 8)
    n_steps = max(2, pl.cdiv(b_min, max_tile_b))
    if n_steps % 2:
        n_steps += 1
    tile_b = _round_up(pl.cdiv(b_min, n_steps), 16)  # 16: f32 + bf16 sublane friendly
    b_pad = tile_b * n_steps
    if b_pad != B:
        x = jnp.pad(x, ((0, b_pad - B), (0, 0)))
    grid = (n_steps,)

    # ---- Cost estimate (HBM/overhead-bound kernel; cheap scheduling hint). ----
    flops = 2 * b_pad * (input_dim * 64 + 64 * hidden_dim + hidden_dim * out_dim)
    transcendentals = b_pad * (64 + hidden_dim + out_dim)
    bytes_accessed = (
        x.dtype.itemsize * b_pad * input_dim
        + 4 * b_pad * out_dim
        + w1.dtype.itemsize * (input_dim * 64 + 64 * hidden_dim + hidden_dim * out_dim)
        + 4 * (64 + hidden_dim + out_dim)
    )

    kernel = functools.partial(encoder_kernel, last_col=out_dim - 1)

    out = pl.pallas_call(
        kernel,
        out_shape=jax.ShapeDtypeStruct((b_pad, out_dim), jnp.float32),
        grid=grid,
        in_specs=[
            # Batch-tiled input: pipelined / double-buffered across the grid.
            pl.BlockSpec((tile_b, input_dim), lambda i: (i, 0)),
            # Weights & biases: constant index_map -> loaded once, VMEM-resident.
            pl.BlockSpec(w1.shape, lambda i: (0, 0)),
            pl.BlockSpec(b1.shape, lambda i: (0, 0)),
            pl.BlockSpec(w2.shape, lambda i: (0, 0)),
            pl.BlockSpec(b2.shape, lambda i: (0, 0)),
            pl.BlockSpec(w3.shape, lambda i: (0, 0)),
            pl.BlockSpec(b3.shape, lambda i: (0, 0)),
        ],
        # Narrow (out_dim-wide) output block: last dim equals the full array dim,
        # so the (8,128) divisibility rule does not apply; writeback bytes shrink 16x.
        out_specs=pl.BlockSpec((tile_b, out_dim), lambda i: (i, 0)),
        compiler_params=pltpu.CompilerParams(
            dimension_semantics=("parallel",),
            vmem_limit_bytes=32 * 1024 * 1024,  # headroom for large tiles on all chips
        ),
        cost_estimate=pl.CostEstimate(
            flops=flops,
            transcendentals=transcendentals,
            bytes_accessed=bytes_accessed,
        ),
    )(x, w1, b1, w2, b2, w3, b3)

    # Strip batch padding (output columns are not padded anymore).
    return out[:B]


def init_params(key, input_dim, hidden_dim, output_dim):
    # Deterministic init (shapes match nn.Linear; stored transposed as (in, out)).
    ks = jax.random.split(key, 6)

    def lin(kw, kb, fan_in, fan_out):
        bound = 1.0 / jnp.sqrt(fan_in)
        w = jax.random.uniform(kw, (fan_in, fan_out), jnp.float32, -bound, bound)
        b = jax.random.uniform(kb, (1, fan_out), jnp.float32, -bound, bound)
        return w, b

    w1, b1 = lin(ks[0], ks[1], input_dim, 64)
    w2, b2 = lin(ks[2], ks[3], 64, hidden_dim)
    w3, b3 = lin(ks[4], ks[5], hidden_dim, output_dim)
    return w1, b1, w2, b2, w3, b3


def reference_forward(x, w1, b1, w2, b2, w3, b3):
    h1 = jax.nn.sigmoid(x @ w1 + b1)
    h2 = jax.nn.sigmoid(h1 @ w2 + b2)
    y = h2 @ w3 + b3
    y = y.at[:, -1].set(jax.nn.sigmoid(y[:, -1]))
    return y


if __name__ == "__main__":
    key = jax.random.PRNGKey(0)
    k_x, k_p = jax.random.split(key)

    batch, input_dim, hidden_dim, output_dim = 8, 32, 32, 8
    x = jax.random.normal(k_x, (batch, input_dim), jnp.float32)
    params = init_params(k_p, input_dim, hidden_dim, output_dim)

    out = jax.block_until_ready(encoder_forward(x, *params))
    ref = reference_forward(x, *params)
    assert out.shape == (batch, output_dim)
    assert jnp.allclose(out, ref, atol=1e-5, rtol=1e-5), "mismatch vs reference"

    # Larger, ragged batch: exercises the derived-tile / even-grid / padding path.
    big_b = 2500
    xb = jax.random.normal(k_x, (big_b, input_dim), jnp.float32)
    out_big = jax.block_until_ready(encoder_forward(xb, *params))
    ref_big = reference_forward(xb, *params)
    assert out_big.shape == (big_b, output_dim)
    assert jnp.allclose(out_big, ref_big, atol=1e-5, rtol=1e-5), "mismatch (big batch)"

    # Optional bf16 MXU-operand path (bandwidth lever on v6e/v7x); looser tolerance.
    out_bf16 = jax.block_until_ready(
        encoder_forward(xb, *params, bf16_matmul_inputs=True))
    assert out_bf16.shape == (big_b, output_dim)
    assert jnp.allclose(out_bf16, ref_big, atol=5e-2, rtol=5e-2), "mismatch (bf16 path)"

    print("KERNEL_OK")
</pallas_src>

<mosaic_0001>
module attributes {stable_mosaic.version = 11 : i64} {
  func.func @encoder_kernel(%arg0: i32, %arg1: memref<16x32xf32, #tpu.memory_space<vmem>>, %arg2: memref<32x64xf32, #tpu.memory_space<vmem>>, %arg3: memref<1x64xf32, #tpu.memory_space<vmem>>, %arg4: memref<64x32xf32, #tpu.memory_space<vmem>>, %arg5: memref<1x32xf32, #tpu.memory_space<vmem>>, %arg6: memref<32x8xf32, #tpu.memory_space<vmem>>, %arg7: memref<1x8xf32, #tpu.memory_space<vmem>>, %arg8: memref<16x8xf32, #tpu.memory_space<vmem>>) attributes {dimension_semantics = [#tpu.dimension_semantics<parallel>], iteration_bounds = array<i64: 2>, scalar_prefetch = 0 : i64, scratch_operands = 0 : i64, tpu.core_type = #tpu.core_type<tc>, window_params = [{transform_indices = @transform_0, window_bounds = array<i64: 16, 32>}, {pipeline_mode = #tpu.pipeline_mode<synchronous>, transform_indices = @transform_1, window_bounds = array<i64: 32, 64>}, {pipeline_mode = #tpu.pipeline_mode<synchronous>, transform_indices = @transform_2, window_bounds = array<i64: 1, 64>}, {pipeline_mode = #tpu.pipeline_mode<synchronous>, transform_indices = @transform_3, window_bounds = array<i64: 64, 32>}, {pipeline_mode = #tpu.pipeline_mode<synchronous>, transform_indices = @transform_4, window_bounds = array<i64: 1, 32>}, {pipeline_mode = #tpu.pipeline_mode<synchronous>, transform_indices = @transform_5, window_bounds = array<i64: 32, 8>}, {pipeline_mode = #tpu.pipeline_mode<synchronous>, transform_indices = @transform_6, window_bounds = array<i64: 1, 8>}, {transform_indices = @transform_7, window_bounds = array<i64: 16, 8>}]} {
    %c0 = arith.constant 0 : index
    %c0_0 = arith.constant 0 : index
    %0 = vector.load %arg1[%c0, %c0_0] : memref<16x32xf32, #tpu.memory_space<vmem>>, vector<16x32xf32>
    %c0_1 = arith.constant 0 : index
    %c0_2 = arith.constant 0 : index
    %1 = vector.load %arg2[%c0_1, %c0_2] : memref<32x64xf32, #tpu.memory_space<vmem>>, vector<32x64xf32>
    %cst = arith.constant dense<0.000000e+00> : vector<16x64xf32>
    %2 = tpu.matmul %0, %1, %cst {dimension_numbers = #tpu.dot_dimension_numbers<[1], [0], [0], [1], [0, 0, 1, 1], [], []>} : vector<16x32xf32>, vector<32x64xf32>, vector<16x64xf32> -> vector<16x64xf32>
    %c0_3 = arith.constant 0 : index
    %c0_4 = arith.constant 0 : index
    %3 = vector.load %arg3[%c0_3, %c0_4] : memref<1x64xf32, #tpu.memory_space<vmem>>, vector<1x64xf32>
    %4 = vector.broadcast %3 : vector<1x64xf32> to vector<16x64xf32>
    %5 = arith.addf %2, %4 : vector<16x64xf32>
    %6 = arith.negf %5 : vector<16x64xf32>
    %7 = math.exp %6 : vector<16x64xf32>
    %cst_5 = arith.constant 1.000000e+00 : f32
    %8 = vector.broadcast %cst_5 : f32 to vector<16x64xf32>
    %9 = arith.addf %8, %7 : vector<16x64xf32>
    %10 = arith.divf %8, %9 : vector<16x64xf32>
    %c0_6 = arith.constant 0 : index
    %c0_7 = arith.constant 0 : index
    %11 = vector.load %arg4[%c0_6, %c0_7] : memref<64x32xf32, #tpu.memory_space<vmem>>, vector<64x32xf32>
    %cst_8 = arith.constant dense<0.000000e+00> : vector<16x32xf32>
    %12 = tpu.matmul %10, %11, %cst_8 {dimension_numbers = #tpu.dot_dimension_numbers<[1], [0], [0], [1], [0, 0, 1, 1], [], []>} : vector<16x64xf32>, vector<64x32xf32>, vector<16x32xf32> -> vector<16x32xf32>
    %c0_9 = arith.constant 0 : index
    %c0_10 = arith.constant 0 : index
    %13 = vector.load %arg5[%c0_9, %c0_10] : memref<1x32xf32, #tpu.memory_space<vmem>>, vector<1x32xf32>
    %14 = vector.broadcast %13 : vector<1x32xf32> to vector<16x32xf32>
    %15 = arith.addf %12, %14 : vector<16x32xf32>
    %16 = arith.negf %15 : vector<16x32xf32>
    %17 = math.exp %16 : vector<16x32xf32>
    %cst_11 = arith.constant 1.000000e+00 : f32
    %18 = vector.broadcast %cst_11 : f32 to vector<16x32xf32>
    %19 = arith.addf %18, %17 : vector<16x32xf32>
    %20 = arith.divf %18, %19 : vector<16x32xf32>
    %c0_12 = arith.constant 0 : index
    %c0_13 = arith.constant 0 : index
    %21 = vector.load %arg6[%c0_12, %c0_13] : memref<32x8xf32, #tpu.memory_space<vmem>>, vector<32x8xf32>
    %cst_14 = arith.constant dense<0.000000e+00> : vector<16x8xf32>
    %22 = tpu.matmul %20, %21, %cst_14 {dimension_numbers = #tpu.dot_dimension_numbers<[1], [0], [0], [1], [0, 0, 1, 1], [], []>} : vector<16x32xf32>, vector<32x8xf32>, vector<16x8xf32> -> vector<16x8xf32>
    %c0_15 = arith.constant 0 : index
    %c0_16 = arith.constant 0 : index
    %23 = vector.load %arg7[%c0_15, %c0_16] : memref<1x8xf32, #tpu.memory_space<vmem>>, vector<1x8xf32>
    %24 = vector.broadcast %23 : vector<1x8xf32> to vector<16x8xf32>
    %25 = arith.addf %22, %24 : vector<16x8xf32>
    %26 = tpu.iota {dimensions = array<i32: 1>} : vector<16x8xi32>
    %c7_i32 = arith.constant 7 : i32
    %27 = vector.broadcast %c7_i32 : i32 to vector<16x8xi32>
    %28 = arith.cmpi eq, %26, %27 : vector<16x8xi32>
    %29 = arith.negf %25 : vector<16x8xf32>
    %30 = math.exp %29 : vector<16x8xf32>
    %cst_17 = arith.constant 1.000000e+00 : f32
    %31 = vector.broadcast %cst_17 : f32 to vector<16x8xf32>
    %32 = arith.addf %31, %30 : vector<16x8xf32>
    %33 = arith.divf %31, %32 : vector<16x8xf32>
    %34 = arith.select %28, %33, %25 : vector<16x8xi1>, vector<16x8xf32>
    %c0_18 = arith.constant 0 : index
    %c0_19 = arith.constant 0 : index
    %35 = vector.load %arg8[%c0_18, %c0_19] : memref<16x8xf32, #tpu.memory_space<vmem>>, vector<16x8xf32>
    tpu.vector_store %arg8[%c0_18, %c0_19], %34 {strides = array<i32>} : memref<16x8xf32, #tpu.memory_space<vmem>>, vector<16x8xf32>,
    return
  }
  func.func @transform_0(%arg0: i32) -> (i32, i32) {
    %c0_i32 = arith.constant 0 : i32
    %c0_i32_0 = arith.constant 0 : i32
    return %arg0, %c0_i32 : i32, i32
  }
  func.func @transform_1(%arg0: i32) -> (i32, i32) {
    %c0_i32 = arith.constant 0 : i32
    %c0_i32_0 = arith.constant 0 : i32
    %c0_i32_1 = arith.constant 0 : i32
    return %c0_i32, %c0_i32_0 : i32, i32
  }
  func.func @transform_2(%arg0: i32) -> (i32, i32) {
    %c0_i32 = arith.constant 0 : i32
    %c0_i32_0 = arith.constant 0 : i32
    %c0_i32_1 = arith.constant 0 : i32
    return %c0_i32, %c0_i32_0 : i32, i32
  }
  func.func @transform_3(%arg0: i32) -> (i32, i32) {
    %c0_i32 = arith.constant 0 : i32
    %c0_i32_0 = arith.constant 0 : i32
    %c0_i32_1 = arith.constant 0 : i32
    return %c0_i32, %c0_i32_0 : i32, i32
  }
  func.func @transform_4(%arg0: i32) -> (i32, i32) {
    %c0_i32 = arith.constant 0 : i32
    %c0_i32_0 = arith.constant 0 : i32
    %c0_i32_1 = arith.constant 0 : i32
    return %c0_i32, %c0_i32_0 : i32, i32
  }
  func.func @transform_5(%arg0: i32) -> (i32, i32) {
    %c0_i32 = arith.constant 0 : i32
    %c0_i32_0 = arith.constant 0 : i32
    %c0_i32_1 = arith.constant 0 : i32
    return %c0_i32, %c0_i32_0 : i32, i32
  }
  func.func @transform_6(%arg0: i32) -> (i32, i32) {
    %c0_i32 = arith.constant 0 : i32
    %c0_i32_0 = arith.constant 0 : i32
    %c0_i32_1 = arith.constant 0 : i32
    return %c0_i32, %c0_i32_0 : i32, i32
  }
  func.func @transform_7(%arg0: i32) -> (i32, i32) {
    %c0_i32 = arith.constant 0 : i32
    %c0_i32_0 = arith.constant 0 : i32
    return %arg0, %c0_i32 : i32, i32
  }
}

</mosaic_0001>

<bundles_post_ra>
// kernel: tpu_custom_call.1
= control target key start
LH: loop header
LB: loop body
LE: loop exit
PB: predicated region body
PF: predicated region fallthrough
CT: control target
= control target key end

     0   :  { %s835_s24 = smov 0   ;;  %s920_s0 = inlined_call_operand.vmem [shape: f32[32,32], index: 0, kind: input, shape index: {}]   ;;  %s921_s1 = inlined_call_operand.vmem [shape: f32[32,64], index: 1, kind: input, shape index: {}]   ;;  %s922_s2 = inlined_call_operand.vmem [shape: f32[1,64], index: 2, kind: input, shape index: {}]   ;;  %s923_s3 = inlined_call_operand.vmem [shape: f32[64,32], index: 3, kind: input, shape index: {}]   ;;  %s924_s4 = inlined_call_operand.vmem [shape: f32[1,32], index: 4, kind: input, shape index: {}]   ;;  %s925_s5 = inlined_call_operand.vmem [shape: f32[32,8], index: 5, kind: input, shape index: {}]   ;;  %s926_s6 = inlined_call_operand.vmem [shape: f32[1,8], index: 6, kind: input, shape index: {}]   ;;  %s927_s7 = inlined_call_operand.vmem [shape: f32[32,8], index: 7, kind: output, shape index: {}]  }
   0x1 LB: > { %s666_s25 = sadd.s32 4294967295, %s793_s24   ;;  %p670_p0 = scmp.ge.s32.totalorder %s793_s24, 1  ;;  %s793_s24 = sphi %s835_s24, %s17_s24  }
   0x2   : > { %p238_p1 = scmp.lt.s32.totalorder %s793_s24, 3 }
   0x4   : > { %p239_p2 = pnand %p670_p0, %p238_p1 }
   0x5   : > { %s671_s30 = sshll.u32 (!%p239_p2), %s666_s25, 1 }
   0x6   : > { %242 = sbr.rel (%p239_p2) target bundleno = 711 (0x2c7), region = 48  ;;  %p271_p3 = scmp.lt.s32.totalorder (!%p239_p2), %s671_s30, 3 }
   0xb   : > { %v287_v0 = vld [vmem:[%s921_s1 + $0x18] sm:$0xff]  ;;  %v286_v1 = vld [vmem:[%s921_s1 + $0x10] sm:$0xff]  ;;  %v285_v2 = vld [vmem:[%s921_s1 + $0x8] sm:$0xff]  ;;  %s929_s30 = smov (!%p271_p3, %s671_s30), 3  ;;  %vm295_vm0 = vcmask 261120   ;;  %vm404_vm1 = vcmask 523264   ;;  %v590_v55 = vlaneseq }
   0xc   : > { %714 = vmatprep.subr.mxu0 %v287_v0  ;;  %v284_v3 = vld [vmem:[%s921_s1] sm:$0xff]  ;;  %s672_s12 = sshll.u32 %s929_s30, 3  ;;  %v396_v6 = vld [vmem:[%s923_s3 + $0x38] sm:$0xff]  ;;  %v395_v7 = vld [vmem:[%s923_s3 + $0x30] sm:$0xff]  ;;  %vm607_vm3 = vcmask 64512  }
   0xd   : > { %715 = vmatpush3.msra.mxu0 %v287_v0  ;;  %s274_s15 = scalar_lea.vmem %s920_s0, %s672_s12  ;;  %725 = vmatprep.subr.mxu1 %v396_v6  ;;  %v394_v8 = vld [vmem:[%s923_s3 + $0x28] sm:$0xff]  ;;  %v393_v9 = vld [vmem:[%s923_s3 + $0x20] sm:$0xff]  ;;  %v392_v10 = vld [vmem:[%s923_s3 + $0x18] sm:$0xff]  ;;  %v591_v56 = vand.u32 127, %v590_v55  ;;  %s280_s29 = scalar_lea.vmem %s927_s7, %s672_s12 }
   0xe   : > { %716 = vmatprep.subr.mxu0 %v286_v1  ;;  %v282_v4 = vld [vmem:[%s274_s15] sm:$0xff]  ;;  %v283_v5 = vld [vmem:[%s274_s15 + $0x8] sm:$0xff]  ;;  %726 = vmatpush3.msra.mxu1 %v396_v6  ;;  %v391_v11 = vld [vmem:[%s923_s3 + $0x10] sm:$0xff] }
   0xf   : > { %717 = vmatpush3.msra.mxu0 %v286_v1  ;;  %722 = vmatprep.mubr.msk.f32.mxu0 %vm295_vm0, %v282_v4  ;;  %v390_v12 = vld [vmem:[%s923_s3 + $0x8] sm:$0xff]  ;;  %v389_v13 = vld [vmem:[%s923_s3] sm:$0xff]  ;;  %v501_v27 = vld [vmem:[%s925_s5 + $0x18] sm:$0xff]  ;;  %vm592_vm2 = vcmp.eq.s32.totalorder %v591_v56, 7 }
  0x10   : > { %718 = vmatprep.subr.mxu0 %v285_v2  ;;  %727 = vmatprep.subr.mxu1 %v395_v7  ;;  %v675_v14 = vld [vmem:[%s922_s2] ss:$0 sm:$0xff]  ;;  %v500_v28 = vld [vmem:[%s925_s5 + $0x10] sm:$0xff]  ;;  %v499_v29 = vld [vmem:[%s925_s5 + $0x8] sm:$0xff] }
  0x11   : > { %719 = vmatpush3.msra.mxu0 %v285_v2  ;;  %728 = vmatpush3.msra.mxu1 %v395_v7  ;;  %v498_v30 = vld [vmem:[%s925_s5] sm:$0xff] }
  0x12   : > { %720 = vmatprep.subr.mxu0 %v284_v3  ;;  %729 = vmatprep.subr.mxu1 %v394_v8  ;;  %v680_v31 = vld [vmem:[%s924_s4] ss:$0 sm:$0xff] }
  0x13   : > { %721 = vmatpush3.msra.mxu0 %v284_v3  ;;  %730 = vmatpush3.msra.mxu1 %v394_v8  ;;  %v685_v44 = vld [vmem:[%s926_s6] ss:$0 sm:$0xff] }
  0x14   : > { %723 = vmatmul.mubr.msk.f32.vlgmr.msra.gmra.mxu0 %vm295_vm0, %v283_v5  ;;  %731 = vmatprep.subr.mxu1 %v393_v9 }
  0x15   : > { %732 = vmatpush3.msra.mxu1 %v393_v9  ;;  %744 = vmatprep.subr.mxu0 %v501_v27 }
  0x16   : > { %733 = vmatprep.subr.mxu1 %v392_v10  ;;  %745 = vmatpush3.msra.mxu0 %v501_v27 }
  0x17   : > { %734 = vmatpush3.msra.mxu1 %v392_v10  ;;  %746 = vmatprep.subr.mxu0 %v500_v28 }
  0x18   : > { %735 = vmatprep.subr.mxu1 %v391_v11  ;;  %747 = vmatpush3.msra.mxu0 %v500_v28 }
  0x19   : > { %736 = vmatpush3.msra.mxu1 %v391_v11  ;;  %748 = vmatprep.subr.mxu0 %v499_v29 }
  0x1a   : > { %737 = vmatprep.subr.mxu1 %v390_v12  ;;  %749 = vmatpush3.msra.mxu0 %v499_v29 }
  0x1b   : > { %738 = vmatpush3.msra.mxu1 %v390_v12  ;;  %750 = vmatprep.subr.mxu0 %v498_v30 }
  0x1c   : > { %739 = vmatprep.subr.mxu1 %v389_v13  ;;  %751 = vmatpush3.msra.mxu0 %v498_v30 }
  0x1d   : > { %740 = vmatpush3.msra.mxu1 %v389_v13 }
  0xd4   : > { %v724_v15 = vpop.f32.mrf.mxu0 }
  0xd5   : > { %v374_v16 = vadd.f32 %v724_v15, %v675_v14 }
  0xd6   : > { %v368_v17 = vpop.f32.mrf.mxu0 }
  0xd7   : > { %v679_v18 = vmul.f32 -1.442695, %v374_v16  ;;  %v369_v19 = vadd.f32 %v675_v14, %v368_v17 }
  0xd9   : > { %763 = vpow2.f32 %v679_v18  ;;  %v678_v20 = vmul.f32 -1.442695, %v369_v19 }
  0xdb   : > { %765 = vpow2.f32 %v678_v20 }
  0xe6   : > { %v764_v21 = vpop.eup %763 }
  0xe7   : > { %v384_v23 = vadd.f32 1.0, %v764_v21 }
  0xe8   : > { %v766_v22 = vpop.eup %765 }
  0xe9   : > { %v383_v24 = vadd.f32 1.0, %v766_v22 }
  0xeb   : > { %767 = vrcp.f32 %v383_v24 }
  0xec   : > { %769 = vrcp.f32 %v384_v23 }
  0xf8   : > { %v768_v25 = vpop.eup %767 }
  0xf9   : > { %v770_v26 = vpop.eup %769  ;;  %741 = vmatprep.mubr.msk.f32.mxu1 %vm404_vm1, %v768_v25 }
  0xfa   : > { %742 = vmatmul.mubr.msk.f32.vlgmr.msra.gmra.mxu1 %vm404_vm1, %v770_v26 }
 0x1ba   : > { %v743_v32 = vpop.f32.mrf.mxu1 }
 0x1bb   : > { %v483_v33 = vadd.f32 %v743_v32, %v680_v31 }
 0x1bc   : > { %v477_v34 = vpop.f32.mrf.mxu1 }
 0x1bd   : > { %v684_v35 = vmul.f32 -1.442695, %v483_v33  ;;  %v478_v36 = vadd.f32 %v680_v31, %v477_v34 }
 0x1bf   : > { %771 = vpow2.f32 %v684_v35  ;;  %v683_v37 = vmul.f32 -1.442695, %v478_v36 }
 0x1c1   : > { %773 = vpow2.f32 %v683_v37 }
 0x1cc   : > { %v772_v38 = vpop.eup %771 }
 0x1cd   : > { %v493_v40 = vadd.f32 1.0, %v772_v38 }
 0x1ce   : > { %v774_v39 = vpop.eup %773 }
 0x1cf   : > { %v492_v41 = vadd.f32 1.0, %v774_v39 }
 0x1d1   : > { %775 = vrcp.f32 %v492_v41 }
 0x1d2   : > { %777 = vrcp.f32 %v493_v40 }
 0x1de   : > { %v776_v42 = vpop.eup %775 }
 0x1df   : > { %v778_v43 = vpop.eup %777  ;;  %752 = vmatprep.mubr.msk.f32.mxu0 %vm295_vm0, %v776_v42 }
 0x1e0   : > { %753 = vmatmul.mubr.msk.f32.vlgmr.msra.gmra.mxu0 %vm295_vm0, %v778_v43 }
 0x2a0   : > { %v754_v45 = vpop.f32.mrf.mxu0 }
 0x2a1   : > { %v587_v46 = vadd.f32 %v754_v45, %v685_v44 }
 0x2a2   : > { %v581_v47 = vpop.f32.mrf.mxu0 }
 0x2a3   : > { %v689_v48 = vmul.f32 -1.442695, %v587_v46  ;;  %v582_v49 = vadd.f32 %v685_v44, %v581_v47 }
 0x2a5   : > { %779 = vpow2.f32 %v689_v48  ;;  %v688_v50 = vmul.f32 -1.442695, %v582_v49 }
 0x2a7   : > { %781 = vpow2.f32 %v688_v50 }
 0x2b2   : > { %v780_v51 = vpop.eup %779 }
 0x2b3   : > { %v600_v52 = vadd.f32 1.0, %v780_v51 }
 0x2b4   : > { %v782_v53 = vpop.eup %781 }
 0x2b5   : > { %v599_v54 = vadd.f32 1.0, %v782_v53  ;;  %783 = vrcp.f32 %v600_v52 }
 0x2b7   : > { %785 = vrcp.f32 %v599_v54 }
 0x2c2   : > { %v784_v57 = vpop.eup %783 }
 0x2c3   : > { %v606_v60 = vsel %vm592_vm2, %v784_v57, %v587_v46 }
 0x2c4   : > { %v786_v58 = vpop.eup %785  ;;  %609 = vst.msk [vmem:[%s280_s29 + $0x8] sm:$0xff] %vm607_vm3, %v606_v60 }
 0x2c5   : > { %v605_v59 = vsel %vm592_vm2, %v786_v58, %v582_v49 }
 0x2c6   : > { %608 = vst.msk [vmem:[%s280_s29] sm:$0xff] %vm607_vm3, %v605_v59 }
 0x2c7 PF: > { %s17_s24 = sadd.s32 1, %s793_s24  }
 0x2c8   : > { %p14_p4 = scmp.ge.s32.totalorder %s17_s24, 4  }
 0x2ca   :  { %16 = sbr.rel (!%p14_p4) target bundleno = 1 (0x1), region = 78 }

</bundles_post_ra>
